<compile_context>
chip_gen: v6e
topology: v6e:2x2x1
jax: 0.10.0
libtpu: 0.0.40
codegen_flags: <defaults>
</compile_context>

<pallas_src>
import jax
import jax.numpy as jnp
import numpy as np
from jax.experimental import pallas as pl
from jax.experimental.pallas import tpu as pltpu


def pam_kernel(xq_ref, xkv_ref, wq_ref, bq_ref, wk_ref, bk_ref, wv_ref, bv_ref,
               gamma_ref, out_ref, q_sc, m_sc, l_sc, acc_sc):
    ki = pl.program_id(2)
    nk = pl.num_programs(2)

    # ---- per-query-tile init: project q once, reset online-softmax state ----
    @pl.when(ki == 0)
    def _init():
        xq_b = xq_ref[...].astype(jnp.bfloat16)
        q = jnp.dot(xq_b, wq_ref[...].astype(jnp.bfloat16),
                    preferred_element_type=jnp.float32) + bq_ref[...]
        q_sc[...] = q.astype(jnp.bfloat16)
        m_sc[...] = jnp.full(m_sc.shape, -jnp.inf, m_sc.dtype)
        l_sc[...] = jnp.zeros(l_sc.shape, l_sc.dtype)
        acc_sc[...] = jnp.zeros(acc_sc.shape, acc_sc.dtype)

    # ---- project k / v from the streamed key tile of x (bf16 MXU, f32 acc) ----
    xkv_b = xkv_ref[...].astype(jnp.bfloat16)
    k = (jnp.dot(xkv_b, wk_ref[...].astype(jnp.bfloat16),
                 preferred_element_type=jnp.float32) + bk_ref[...]).astype(jnp.bfloat16)
    v = (jnp.dot(xkv_b, wv_ref[...].astype(jnp.bfloat16),
                 preferred_element_type=jnp.float32) + bv_ref[...]).astype(jnp.bfloat16)

    # energy tile: s[i, j] = <q_i, k_j>  (contract channel dim; zero-padded
    # channels contribute nothing)
    s = jax.lax.dot_general(q_sc[...], k, (((1,), (1,)), ((), ())),
                            preferred_element_type=jnp.float32)          # (TQ, TK)

    # ---- online softmax update ----
    m_prev = m_sc[...]
    m_new = jnp.maximum(m_prev, jnp.max(s, axis=-1, keepdims=True))
    alpha = jnp.exp(m_prev - m_new)
    p = jnp.exp(s - m_new)
    l_sc[...] = alpha * l_sc[...] + jnp.sum(p, axis=-1, keepdims=True)
    acc_sc[...] = alpha * acc_sc[...] + jnp.dot(p.astype(jnp.bfloat16), v,
                                                preferred_element_type=jnp.float32)
    m_sc[...] = m_new

    # ---- finalize: normalize, residual + gamma scale ----
    @pl.when(ki == nk - 1)
    def _finalize():
        o = acc_sc[...] * pl.reciprocal(l_sc[...], approx=True)
        g = gamma_ref[0, 0]
        out_ref[...] = (g * o + xq_ref[...].astype(jnp.float32)).astype(out_ref.dtype)


def _pick_tile(n, target):
    """Largest tile <= target that divides n and is a multiple of 8 (else n)."""
    if n <= target:
        return n
    for t in range((target // 8) * 8, 0, -8):
        if n % t == 0:
            return t
    return n   # TODO(synk): ragged N with no 8-aligned divisor falls back to a full block.


def _round_up(x, m):
    return ((x + m - 1) // m) * m


def pam_forward(x_nchw, params, *, tile_target=None):
    B, C, H, W = x_nchw.shape
    N = H * W
    C8 = params["wq"].shape[1]

    if tile_target is None:
        kind = ""
        try:
            kind = jax.devices()[0].device_kind.lower()
        except Exception:
            pass
        # v6e: 128 MiB VMEM -> big tiles; v5e/v7x/unknown -> 512.
        tile_target = 1024 if "v6" in kind else 512

    TQ = _pick_tile(N, tile_target)
    TK = _pick_tile(N, tile_target)
    nq, nk = N // TQ, N // TK

    # Zero-pad query/key channel dim (C//8) up to a lane-dense multiple of 128.
    C8p = _round_up(max(C8, 128), 128)
    pad = C8p - C8
    wq = jnp.pad(params["wq"], ((0, 0), (0, pad)))
    wk = jnp.pad(params["wk"], ((0, 0), (0, pad)))
    bq = jnp.pad(params["bq"], ((0, 0), (0, pad)))
    bk = jnp.pad(params["bk"], ((0, 0), (0, pad)))

    x_bnc = jnp.transpose(x_nchw.reshape(B, C, N), (0, 2, 1))   # (B, N, C)

    vmem_limit = (100 << 20) if tile_target >= 1024 else (64 << 20)

    out_bnc = pl.pallas_call(
        pam_kernel,
        out_shape=jax.ShapeDtypeStruct((B, N, C), x_bnc.dtype),
        grid_spec=pltpu.PrefetchScalarGridSpec(
            num_scalar_prefetch=0,
            grid=(B, nq, nk),
            in_specs=[
                # x, query-tile rows (resident across the key loop; batch squeezed)
                pl.BlockSpec((None, TQ, C), lambda b, qi, ki: (b, qi, 0)),
                # x again, key/value-tile rows (streamed along ki)
                pl.BlockSpec((None, TK, C), lambda b, qi, ki: (b, ki, 0)),
                pl.BlockSpec((C, C8p), lambda b, qi, ki: (0, 0)),   # wq
                pl.BlockSpec((1, C8p), lambda b, qi, ki: (0, 0)),   # bq
                pl.BlockSpec((C, C8p), lambda b, qi, ki: (0, 0)),   # wk
                pl.BlockSpec((1, C8p), lambda b, qi, ki: (0, 0)),   # bk
                pl.BlockSpec((C, C), lambda b, qi, ki: (0, 0)),     # wv
                pl.BlockSpec((1, C), lambda b, qi, ki: (0, 0)),     # bv
                pl.BlockSpec(memory_space=pltpu.MemorySpace.SMEM),  # gamma (scalar)
            ],
            out_specs=pl.BlockSpec((None, TQ, C), lambda b, qi, ki: (b, qi, 0)),
            scratch_shapes=[
                pltpu.VMEM((TQ, C8p), jnp.bfloat16),   # cached q tile
                pltpu.VMEM((TQ, 1), jnp.float32),      # running max
                pltpu.VMEM((TQ, 1), jnp.float32),      # running denominator
                pltpu.VMEM((TQ, C), jnp.float32),      # output accumulator
            ],
        ),
        compiler_params=pltpu.CompilerParams(
            dimension_semantics=("parallel", "parallel", "arbitrary"),
            vmem_limit_bytes=vmem_limit,
        ),
    )(x_bnc, x_bnc, wq, bq, wk, bk, params["wv"], params["bv"], params["gamma"])

    return jnp.transpose(out_bnc, (0, 2, 1)).reshape(B, C, H, W)


def pam_reference(x_nchw, params):
    """Pure-JAX f32 reference mirroring the PyTorch forward exactly."""
    B, C, H, W = x_nchw.shape
    N = H * W
    x_bnc = jnp.transpose(x_nchw.reshape(B, C, N), (0, 2, 1)).astype(jnp.float32)
    q = x_bnc @ params["wq"] + params["bq"]
    k = x_bnc @ params["wk"] + params["bk"]
    v = x_bnc @ params["wv"] + params["bv"]
    energy = jnp.einsum("bic,bjc->bij", q, k)
    attn = jax.nn.softmax(energy, axis=-1)
    o = jnp.einsum("bij,bjc->bic", attn, v)
    out = params["gamma"][0, 0] * o + x_bnc
    return jnp.transpose(out, (0, 2, 1)).reshape(B, C, H, W)


def init_params(key, C, gamma=0.0):
    """Deterministic init; 1x1 conv weights stored transposed as (Cin, Cout)."""
    C8 = C // 8
    ks = jax.random.split(key, 6)
    s = 1.0 / np.sqrt(C)   # ~ PyTorch conv default uniform bound
    return {
        "wq": jax.random.uniform(ks[0], (C, C8), jnp.float32, -s, s),
        "bq": jax.random.uniform(ks[1], (1, C8), jnp.float32, -s, s),
        "wk": jax.random.uniform(ks[2], (C, C8), jnp.float32, -s, s),
        "bk": jax.random.uniform(ks[3], (1, C8), jnp.float32, -s, s),
        "wv": jax.random.uniform(ks[4], (C, C), jnp.float32, -s, s),
        "bv": jax.random.uniform(ks[5], (1, C), jnp.float32, -s, s),
        # nn.Parameter(torch.zeros(1)) -> gamma = 0 at init
        "gamma": jnp.full((1, 1), gamma, jnp.float32),
    }


if __name__ == "__main__":
    key = jax.random.PRNGKey(0)
    kx, kp, kx2 = jax.random.split(key, 3)

    # Small shapes: in_dim=16 -> query/key channels = 16 // 8 = 2.
    B, C, H, W = 2, 16, 8, 8
    x = jax.random.normal(kx, (B, C, H, W), jnp.float32)
    params = init_params(kp, C, gamma=0.0)

    # gamma = 0 (module init): out must equal x (residual path is exact).
    out0 = jax.block_until_ready(pam_forward(x, params))
    assert out0.shape == x.shape and out0.dtype == x.dtype
    np.testing.assert_allclose(np.asarray(out0), np.asarray(x), rtol=0, atol=1e-6)

    # Non-zero gamma so the attention path actually contributes.
    # (bf16 MXU operands -> looser tolerance vs the f32 reference.)
    params_nz = dict(params, gamma=jnp.full((1, 1), 0.75, jnp.float32))
    out_nz = jax.block_until_ready(pam_forward(x, params_nz))
    ref_nz = pam_reference(x, params_nz)
    np.testing.assert_allclose(np.asarray(out_nz), np.asarray(ref_nz),
                               rtol=2e-2, atol=2e-2)

    # Multi-tile path: force small tiles so the online-softmax loop runs
    # several key/query tiles (exercises the flash-style accumulation).
    H2 = W2 = 16
    x2 = jax.random.normal(kx2, (B, C, H2, W2), jnp.float32)
    out_mt = jax.block_until_ready(pam_forward(x2, params_nz, tile_target=64))
    ref_mt = pam_reference(x2, params_nz)
    np.testing.assert_allclose(np.asarray(out_mt), np.asarray(ref_mt),
                               rtol=2e-2, atol=2e-2)

    print("KERNEL_OK")
</pallas_src>

<mosaic_0001>
module attributes {stable_mosaic.version = 11 : i64} {
  func.func @pam_kernel(%arg0: i32, %arg1: i32, %arg2: i32, %arg3: memref<1x64x16xf32, #tpu.memory_space<vmem>>, %arg4: memref<1x64x16xf32, #tpu.memory_space<vmem>>, %arg5: memref<16x128xf32, #tpu.memory_space<vmem>>, %arg6: memref<1x128xf32, #tpu.memory_space<vmem>>, %arg7: memref<16x128xf32, #tpu.memory_space<vmem>>, %arg8: memref<1x128xf32, #tpu.memory_space<vmem>>, %arg9: memref<16x16xf32, #tpu.memory_space<vmem>>, %arg10: memref<1x16xf32, #tpu.memory_space<vmem>>, %arg11: memref<1x1xf32, #tpu.memory_space<smem>>, %arg12: memref<1x64x16xf32, #tpu.memory_space<vmem>>, %arg13: memref<64x128xbf16, #tpu.memory_space<vmem>>, %arg14: memref<64x1xf32, #tpu.memory_space<vmem>>, %arg15: memref<64x1xf32, #tpu.memory_space<vmem>>, %arg16: memref<64x16xf32, #tpu.memory_space<vmem>>) attributes {dimension_semantics = [#tpu.dimension_semantics<parallel>, #tpu.dimension_semantics<parallel>, #tpu.dimension_semantics<arbitrary>], iteration_bounds = array<i64: 2, 1, 1>, scalar_prefetch = 0 : i64, scratch_operands = 4 : i64, tpu.core_type = #tpu.core_type<tc>, window_params = [{transform_indices = @transform_0, window_bounds = array<i64: 1, 64, 16>}, {transform_indices = @transform_1, window_bounds = array<i64: 1, 64, 16>}, {pipeline_mode = #tpu.pipeline_mode<synchronous>, transform_indices = @transform_2, window_bounds = array<i64: 16, 128>}, {pipeline_mode = #tpu.pipeline_mode<synchronous>, transform_indices = @transform_3, window_bounds = array<i64: 1, 128>}, {pipeline_mode = #tpu.pipeline_mode<synchronous>, transform_indices = @transform_4, window_bounds = array<i64: 16, 128>}, {pipeline_mode = #tpu.pipeline_mode<synchronous>, transform_indices = @transform_5, window_bounds = array<i64: 1, 128>}, {pipeline_mode = #tpu.pipeline_mode<synchronous>, transform_indices = @transform_6, window_bounds = array<i64: 16, 16>}, {pipeline_mode = #tpu.pipeline_mode<synchronous>, transform_indices = @transform_7, window_bounds = array<i64: 1, 16>}, {transform_indices = @transform_8, window_bounds = array<i64: 1, 1>}, {transform_indices = @transform_9, window_bounds = array<i64: 1, 64, 16>}]} {
    %c0_i32 = arith.constant 0 : i32
    %0 = arith.cmpi eq, %arg2, %c0_i32 : i32
    %1 = arith.extui %0 : i1 to i32
    %c0_i32_0 = arith.constant 0 : i32
    %2 = arith.cmpi ne, %1, %c0_i32_0 : i32
    scf.if %2 {
      %c0_32 = arith.constant 0 : index
      %c0_33 = arith.constant 0 : index
      %c0_34 = arith.constant 0 : index
      %48 = vector.load %arg3[%c0_32, %c0_33, %c0_34] : memref<1x64x16xf32, #tpu.memory_space<vmem>>, vector<1x64x16xf32>
      %49 = vector.shape_cast %48 : vector<1x64x16xf32> to vector<64x16xf32>
      %50 = arith.truncf %49 : vector<64x16xf32> to vector<64x16xbf16>
      %c0_35 = arith.constant 0 : index
      %c0_36 = arith.constant 0 : index
      %51 = vector.load %arg5[%c0_35, %c0_36] : memref<16x128xf32, #tpu.memory_space<vmem>>, vector<16x128xf32>
      %52 = arith.truncf %51 : vector<16x128xf32> to vector<16x128xbf16>
      %cst_37 = arith.constant dense<0.000000e+00> : vector<64x128xf32>
      %53 = tpu.matmul %50, %52, %cst_37 {dimension_numbers = #tpu.dot_dimension_numbers<[1], [0], [0], [1], [0, 0, 1, 1], [], []>} : vector<64x16xbf16>, vector<16x128xbf16>, vector<64x128xf32> -> vector<64x128xf32>
      %c0_38 = arith.constant 0 : index
      %c0_39 = arith.constant 0 : index
      %54 = vector.load %arg6[%c0_38, %c0_39] : memref<1x128xf32, #tpu.memory_space<vmem>>, vector<1x128xf32>
      %55 = vector.broadcast %54 : vector<1x128xf32> to vector<64x128xf32>
      %56 = arith.addf %53, %55 : vector<64x128xf32>
      %57 = arith.truncf %56 : vector<64x128xf32> to vector<64x128xbf16>
      %c0_40 = arith.constant 0 : index
      %c0_41 = arith.constant 0 : index
      %58 = vector.load %arg13[%c0_40, %c0_41] : memref<64x128xbf16, #tpu.memory_space<vmem>>, vector<64x128xbf16>
      tpu.vector_store %arg13[%c0_40, %c0_41], %57 {strides = array<i32>} : memref<64x128xbf16, #tpu.memory_space<vmem>>, vector<64x128xbf16>,
      %cst_42 = arith.constant 0xFF800000 : f32
      %59 = vector.broadcast %cst_42 : f32 to vector<64x1xf32>
      %c0_43 = arith.constant 0 : index
      %c0_44 = arith.constant 0 : index
      %60 = vector.load %arg14[%c0_43, %c0_44] : memref<64x1xf32, #tpu.memory_space<vmem>>, vector<64x1xf32>
      tpu.vector_store %arg14[%c0_43, %c0_44], %59 {strides = array<i32>} : memref<64x1xf32, #tpu.memory_space<vmem>>, vector<64x1xf32>,
      %cst_45 = arith.constant 0.000000e+00 : f32
      %61 = vector.broadcast %cst_45 : f32 to vector<64x1xf32>
      %c0_46 = arith.constant 0 : index
      %c0_47 = arith.constant 0 : index
      %62 = vector.load %arg15[%c0_46, %c0_47] : memref<64x1xf32, #tpu.memory_space<vmem>>, vector<64x1xf32>
      tpu.vector_store %arg15[%c0_46, %c0_47], %61 {strides = array<i32>} : memref<64x1xf32, #tpu.memory_space<vmem>>, vector<64x1xf32>,
      %cst_48 = arith.constant 0.000000e+00 : f32
      %63 = vector.broadcast %cst_48 : f32 to vector<64x16xf32>
      %c0_49 = arith.constant 0 : index
      %c0_50 = arith.constant 0 : index
      %64 = vector.load %arg16[%c0_49, %c0_50] : memref<64x16xf32, #tpu.memory_space<vmem>>, vector<64x16xf32>
      tpu.vector_store %arg16[%c0_49, %c0_50], %63 {strides = array<i32>} : memref<64x16xf32, #tpu.memory_space<vmem>>, vector<64x16xf32>,
    } else {
    }
    %c0 = arith.constant 0 : index
    %c0_1 = arith.constant 0 : index
    %c0_2 = arith.constant 0 : index
    %3 = vector.load %arg4[%c0, %c0_1, %c0_2] : memref<1x64x16xf32, #tpu.memory_space<vmem>>, vector<1x64x16xf32>
    %4 = vector.shape_cast %3 : vector<1x64x16xf32> to vector<64x16xf32>
    %5 = arith.truncf %4 : vector<64x16xf32> to vector<64x16xbf16>
    %c0_3 = arith.constant 0 : index
    %c0_4 = arith.constant 0 : index
    %6 = vector.load %arg7[%c0_3, %c0_4] : memref<16x128xf32, #tpu.memory_space<vmem>>, vector<16x128xf32>
    %7 = arith.truncf %6 : vector<16x128xf32> to vector<16x128xbf16>
    %cst = arith.constant dense<0.000000e+00> : vector<64x128xf32>
    %8 = tpu.matmul %5, %7, %cst {dimension_numbers = #tpu.dot_dimension_numbers<[1], [0], [0], [1], [0, 0, 1, 1], [], []>} : vector<64x16xbf16>, vector<16x128xbf16>, vector<64x128xf32> -> vector<64x128xf32>
    %c0_5 = arith.constant 0 : index
    %c0_6 = arith.constant 0 : index
    %9 = vector.load %arg8[%c0_5, %c0_6] : memref<1x128xf32, #tpu.memory_space<vmem>>, vector<1x128xf32>
    %10 = vector.broadcast %9 : vector<1x128xf32> to vector<64x128xf32>
    %11 = arith.addf %8, %10 : vector<64x128xf32>
    %12 = arith.truncf %11 : vector<64x128xf32> to vector<64x128xbf16>
    %c0_7 = arith.constant 0 : index
    %c0_8 = arith.constant 0 : index
    %13 = vector.load %arg9[%c0_7, %c0_8] : memref<16x16xf32, #tpu.memory_space<vmem>>, vector<16x16xf32>
    %14 = arith.truncf %13 : vector<16x16xf32> to vector<16x16xbf16>
    %cst_9 = arith.constant dense<0.000000e+00> : vector<64x16xf32>
    %15 = tpu.matmul %5, %14, %cst_9 {dimension_numbers = #tpu.dot_dimension_numbers<[1], [0], [0], [1], [0, 0, 1, 1], [], []>} : vector<64x16xbf16>, vector<16x16xbf16>, vector<64x16xf32> -> vector<64x16xf32>
    %c0_10 = arith.constant 0 : index
    %c0_11 = arith.constant 0 : index
    %16 = vector.load %arg10[%c0_10, %c0_11] : memref<1x16xf32, #tpu.memory_space<vmem>>, vector<1x16xf32>
    %17 = vector.broadcast %16 : vector<1x16xf32> to vector<64x16xf32>
    %18 = arith.addf %15, %17 : vector<64x16xf32>
    %19 = arith.truncf %18 : vector<64x16xf32> to vector<64x16xbf16>
    %c0_12 = arith.constant 0 : index
    %c0_13 = arith.constant 0 : index
    %20 = vector.load %arg13[%c0_12, %c0_13] : memref<64x128xbf16, #tpu.memory_space<vmem>>, vector<64x128xbf16>
    %cst_14 = arith.constant dense<0.000000e+00> : vector<64x64xf32>
    %21 = tpu.matmul %20, %12, %cst_14 {dimension_numbers = #tpu.dot_dimension_numbers<[1], [1], [0], [0], [0, 0, 1, 0], [], []>} : vector<64x128xbf16>, vector<64x128xbf16>, vector<64x64xf32> -> vector<64x64xf32>
    %c0_15 = arith.constant 0 : index
    %c0_16 = arith.constant 0 : index
    %22 = vector.load %arg14[%c0_15, %c0_16] : memref<64x1xf32, #tpu.memory_space<vmem>>, vector<64x1xf32>
    %cst_17 = arith.constant dense<0xFF800000> : vector<64xf32>
    %23 = vector.multi_reduction <maximumf>, %21, %cst_17 [1] : vector<64x64xf32> to vector<64xf32>
    %24 = vector.shape_cast %23 : vector<64xf32> to vector<64x1xf32>
    %25 = arith.maximumf %22, %24 : vector<64x1xf32>
    %26 = arith.subf %22, %25 : vector<64x1xf32>
    %27 = math.exp %26 : vector<64x1xf32>
    %28 = vector.broadcast %25 : vector<64x1xf32> to vector<64x64xf32>
    %29 = arith.subf %21, %28 : vector<64x64xf32>
    %30 = math.exp %29 : vector<64x64xf32>
    %c0_18 = arith.constant 0 : index
    %c0_19 = arith.constant 0 : index
    %31 = vector.load %arg15[%c0_18, %c0_19] : memref<64x1xf32, #tpu.memory_space<vmem>>, vector<64x1xf32>
    %32 = arith.mulf %27, %31 : vector<64x1xf32>
    %cst_20 = arith.constant dense<0.000000e+00> : vector<64xf32>
    %33 = vector.multi_reduction <add>, %30, %cst_20 [1] : vector<64x64xf32> to vector<64xf32>
    %34 = vector.shape_cast %33 : vector<64xf32> to vector<64x1xf32>
    %35 = arith.addf %32, %34 : vector<64x1xf32>
    %c0_21 = arith.constant 0 : index
    %c0_22 = arith.constant 0 : index
    %36 = vector.load %arg15[%c0_21, %c0_22] : memref<64x1xf32, #tpu.memory_space<vmem>>, vector<64x1xf32>
    tpu.vector_store %arg15[%c0_21, %c0_22], %35 {strides = array<i32>} : memref<64x1xf32, #tpu.memory_space<vmem>>, vector<64x1xf32>,
    %c0_23 = arith.constant 0 : index
    %c0_24 = arith.constant 0 : index
    %37 = vector.load %arg16[%c0_23, %c0_24] : memref<64x16xf32, #tpu.memory_space<vmem>>, vector<64x16xf32>
    %38 = vector.broadcast %27 : vector<64x1xf32> to vector<64x16xf32>
    %39 = arith.mulf %38, %37 : vector<64x16xf32>
    %40 = arith.truncf %30 : vector<64x64xf32> to vector<64x64xbf16>
    %cst_25 = arith.constant dense<0.000000e+00> : vector<64x16xf32>
    %41 = tpu.matmul %40, %19, %cst_25 {dimension_numbers = #tpu.dot_dimension_numbers<[1], [0], [0], [1], [0, 0, 1, 1], [], []>} : vector<64x64xbf16>, vector<64x16xbf16>, vector<64x16xf32> -> vector<64x16xf32>
    %42 = arith.addf %39, %41 : vector<64x16xf32>
    %c0_26 = arith.constant 0 : index
    %c0_27 = arith.constant 0 : index
    %43 = vector.load %arg16[%c0_26, %c0_27] : memref<64x16xf32, #tpu.memory_space<vmem>>, vector<64x16xf32>
    tpu.vector_store %arg16[%c0_26, %c0_27], %42 {strides = array<i32>} : memref<64x16xf32, #tpu.memory_space<vmem>>, vector<64x16xf32>,
    %c0_28 = arith.constant 0 : index
    %c0_29 = arith.constant 0 : index
    %44 = vector.load %arg14[%c0_28, %c0_29] : memref<64x1xf32, #tpu.memory_space<vmem>>, vector<64x1xf32>
    tpu.vector_store %arg14[%c0_28, %c0_29], %25 {strides = array<i32>} : memref<64x1xf32, #tpu.memory_space<vmem>>, vector<64x1xf32>,
    %c0_i32_30 = arith.constant 0 : i32
    %45 = arith.cmpi eq, %arg2, %c0_i32_30 : i32
    %46 = arith.extui %45 : i1 to i32
    %c0_i32_31 = arith.constant 0 : i32
    %47 = arith.cmpi ne, %46, %c0_i32_31 : i32
    scf.if %47 {
      %c0_32 = arith.constant 0 : index
      %c0_33 = arith.constant 0 : index
      %48 = vector.load %arg16[%c0_32, %c0_33] : memref<64x16xf32, #tpu.memory_space<vmem>>, vector<64x16xf32>
      %c0_34 = arith.constant 0 : index
      %c0_35 = arith.constant 0 : index
      %49 = vector.load %arg15[%c0_34, %c0_35] : memref<64x1xf32, #tpu.memory_space<vmem>>, vector<64x1xf32>
      %50 = tpu.reciprocal %49 {approx = true} : vector<64x1xf32> -> vector<64x1xf32>
      %51 = vector.broadcast %50 : vector<64x1xf32> to vector<64x16xf32>
      %52 = arith.mulf %48, %51 : vector<64x16xf32>
      %c0_36 = arith.constant 0 : index
      %c0_37 = arith.constant 0 : index
      %53 = memref.load %arg11[%c0_36, %c0_37] : memref<1x1xf32, #tpu.memory_space<smem>>
      %54 = vector.broadcast %53 : f32 to vector<64x16xf32>
      %55 = arith.mulf %54, %52 : vector<64x16xf32>
      %c0_38 = arith.constant 0 : index
      %c0_39 = arith.constant 0 : index
      %c0_40 = arith.constant 0 : index
      %56 = vector.load %arg3[%c0_38, %c0_39, %c0_40] : memref<1x64x16xf32, #tpu.memory_space<vmem>>, vector<1x64x16xf32>
      %57 = vector.shape_cast %56 : vector<1x64x16xf32> to vector<64x16xf32>
      %58 = arith.addf %55, %57 : vector<64x16xf32>
      %c0_41 = arith.constant 0 : index
      %c0_42 = arith.constant 0 : index
      %c0_43 = arith.constant 0 : index
      %59 = vector.load %arg12[%c0_41, %c0_42, %c0_43] : memref<1x64x16xf32, #tpu.memory_space<vmem>>, vector<1x64x16xf32>
      %60 = vector.shape_cast %59 : vector<1x64x16xf32> to vector<64x16xf32>
      %61 = vector.shape_cast %58 : vector<64x16xf32> to vector<1x64x16xf32>
      tpu.vector_store %arg12[%c0_41, %c0_42, %c0_43], %61 {strides = array<i32>} : memref<1x64x16xf32, #tpu.memory_space<vmem>>, vector<1x64x16xf32>,
    } else {
    }
    return
  }
  func.func @transform_0(%arg0: i32, %arg1: i32, %arg2: i32) -> (i32, i32, i32) {
    %c0_i32 = arith.constant 0 : i32
    %c0_i32_0 = arith.constant 0 : i32
    return %arg0, %arg1, %c0_i32 : i32, i32, i32
  }
  func.func @transform_1(%arg0: i32, %arg1: i32, %arg2: i32) -> (i32, i32, i32) {
    %c0_i32 = arith.constant 0 : i32
    %c0_i32_0 = arith.constant 0 : i32
    return %arg0, %arg2, %c0_i32 : i32, i32, i32
  }
  func.func @transform_2(%arg0: i32, %arg1: i32, %arg2: i32) -> (i32, i32) {
    %c0_i32 = arith.constant 0 : i32
    %c0_i32_0 = arith.constant 0 : i32
    %c0_i32_1 = arith.constant 0 : i32
    return %c0_i32, %c0_i32_0 : i32, i32
  }
  func.func @transform_3(%arg0: i32, %arg1: i32, %arg2: i32) -> (i32, i32) {
    %c0_i32 = arith.constant 0 : i32
    %c0_i32_0 = arith.constant 0 : i32
    %c0_i32_1 = arith.constant 0 : i32
    return %c0_i32, %c0_i32_0 : i32, i32
  }
  func.func @transform_4(%arg0: i32, %arg1: i32, %arg2: i32) -> (i32, i32) {
    %c0_i32 = arith.constant 0 : i32
    %c0_i32_0 = arith.constant 0 : i32
    %c0_i32_1 = arith.constant 0 : i32
    return %c0_i32, %c0_i32_0 : i32, i32
  }
  func.func @transform_5(%arg0: i32, %arg1: i32, %arg2: i32) -> (i32, i32) {
    %c0_i32 = arith.constant 0 : i32
    %c0_i32_0 = arith.constant 0 : i32
    %c0_i32_1 = arith.constant 0 : i32
    return %c0_i32, %c0_i32_0 : i32, i32
  }
  func.func @transform_6(%arg0: i32, %arg1: i32, %arg2: i32) -> (i32, i32) {
    %c0_i32 = arith.constant 0 : i32
    %c0_i32_0 = arith.constant 0 : i32
    %c0_i32_1 = arith.constant 0 : i32
    return %c0_i32, %c0_i32_0 : i32, i32
  }
  func.func @transform_7(%arg0: i32, %arg1: i32, %arg2: i32) -> (i32, i32) {
    %c0_i32 = arith.constant 0 : i32
    %c0_i32_0 = arith.constant 0 : i32
    %c0_i32_1 = arith.constant 0 : i32
    return %c0_i32, %c0_i32_0 : i32, i32
  }
  func.func @transform_8(%arg0: i32, %arg1: i32, %arg2: i32) -> (i32, i32) {
    %c0_i32 = arith.constant 0 : i32
    %c0_i32_0 = arith.constant 0 : i32
    %c0_i32_1 = arith.constant 0 : i32
    return %c0_i32, %c0_i32_0 : i32, i32
  }
  func.func @transform_9(%arg0: i32, %arg1: i32, %arg2: i32) -> (i32, i32, i32) {
    %c0_i32 = arith.constant 0 : i32
    %c0_i32_0 = arith.constant 0 : i32
    return %arg0, %arg1, %c0_i32 : i32, i32, i32
  }
}

</mosaic_0001>

<bundles_post_ra>
// kernel: tpu_custom_call.1
= control target key start
LH: loop header
LB: loop body
LE: loop exit
PB: predicated region body
PF: predicated region fallthrough
CT: control target
= control target key end

     0   :  { %s1762_s11 = smov 0   ;;  %s1764_s12 = smov 0   ;;  %s2110_s0 = inlined_call_operand.vmem [shape: f32[2,64,16], index: 0, kind: input, shape index: {}]   ;;  %s2111_s1 = inlined_call_operand.vmem [shape: f32[2,64,16], index: 1, kind: input, shape index: {}]   ;;  %s2112_s2 = inlined_call_operand.vmem [shape: f32[16,128], index: 2, kind: input, shape index: {}]   ;;  %s2113_s3 = inlined_call_operand.vmem [shape: f32[1,128], index: 3, kind: input, shape index: {}]   ;;  %s2114_s4 = inlined_call_operand.vmem [shape: f32[16,128], index: 4, kind: input, shape index: {}]   ;;  %s2115_s5 = inlined_call_operand.vmem [shape: f32[1,128], index: 5, kind: input, shape index: {}]   ;;  %s2116_s6 = inlined_call_operand.vmem [shape: f32[16,16], index: 6, kind: input, shape index: {}]   ;;  %s2117_s7 = inlined_call_operand.vmem [shape: f32[1,16], index: 7, kind: input, shape index: {}]   ;;  %s2118_s8 = inlined_call_operand.<no memory space> [shape: f32[1,1], index: 8, kind: input, shape index: {}]   ;;  %s2119_s9 = inlined_call_operand.vmem [shape: f32[2,64,16], index: 9, kind: output, shape index: {}]  }
   0x1   :  { %14 = sst [smem:[#allocation6]] %s2118_s8  ;;  %s1766_s13 = smov 0  }
   0x2 LB: > { %s39_s8 = sadd.s32 1, %s1700_s12  ;;  %p1434_p0 = scmp.ge.s32.totalorder %s1704_s13, 1  ;;  %s1704_s13 = sphi %s1766_s13, %s20_s13   ;;  %s1700_s12 = sphi %s1764_s12, %s2121_s12   ;;  %s1696_s11 = sphi %s1762_s11, %s2120_s11  }
   0x3   : > { %p41_p1 = scmp.ge.s32.totalorder %s39_s8, 2  ;;  %p333_p2 = scmp.lt.s32.totalorder %s1704_s13, 3 }
   0x5   : > { %s2123_s8 = smov (%p41_p1, %s39_s8), 0  ;;  %p334_p3 = pnand %p1434_p0, %p333_p2 }
   0x6   : > { %p387_p4 = scmp.lt.s32.totalorder (!%p334_p3), %s1696_s11, 1  ;;  %s1288_s20 = sld [smem:[#allocation6]] (!%p334_p3) }
   0x7   : > { %337 = sbr.rel (%p334_p3) target bundleno = 1057 (0x421), region = 56 }
   0xc   : > { %v598_v0 = vld [vmem:[%s2114_s4] sm:$0xff]  ;;  %v599_v1 = vld [vmem:[%s2114_s4 + $0x8] sm:$0xff]  ;;  %s2125_s11 = smov (!%p387_p4, %s1696_s11), 1  ;;  %vm443_vm0 = vcmask 130048   ;;  %vm561_vm1 = vcmask 7168   ;;  %vm874_vm2 = vcmask 523264  }
   0xd   : > { %v433_v2 = vld [vmem:[%s2112_s2] sm:$0xff]  ;;  %v600_v3 = vpack.c.bf16 %v599_v1, %v598_v0  ;;  %v434_v4 = vld [vmem:[%s2112_s2 + $0x8] sm:$0xff]  ;;  %s1792_s22 = sshll.u32 %s2125_s11, 6 }
   0xe   : > { %v435_v5 = vpack.c.bf16 %v434_v4, %v433_v2  ;;  %s1798_s25 = scalar_lea.vmem %s2110_s0, %s1792_s22  ;;  %s404_s28 = scalar_lea.vmem %s2111_s1, %s1792_s22  ;;  %v1441_v33 = vld [vmem:[%s2113_s3] ss:$0 sm:$0xff] }
   0xf   : > { %1549 = vmatprep.subr.bf16.mxu1 %v600_v3  ;;  %v586_v6 = vld [vmem:[%s404_s28] sm:$0xff]  ;;  %v587_v7 = vld [vmem:[%s404_s28 + $0x8] sm:$0xff]  ;;  %v588_v8 = vld [vmem:[%s404_s28 + $0x10] sm:$0xff]  ;;  %s2075_s24 = scalar_lea.vmem %s2119_s9, %s1792_s22 }
  0x10   : > { %1550 = vmatpush3.bf16.msra.mxu1 %v600_v3  ;;  %1539 = vmatprep.subr.bf16.mxu0 %v435_v5  ;;  %v594_v9 = vpack.c.bf16 %v587_v7, %v586_v6  ;;  %v589_v10 = vld [vmem:[%s404_s28 + $0x18] sm:$0xff]  ;;  %v590_v11 = vld [vmem:[%s404_s28 + $0x20] sm:$0xff]  ;;  %v591_v12 = vld [vmem:[%s404_s28 + $0x28] sm:$0xff] }
  0x11   : > { %1540 = vmatpush3.bf16.msra.mxu0 %v435_v5  ;;  %v1804_v13 = vpack.c.bf16 %v589_v10, %v588_v8  ;;  %v1806_v14 = vpack.c.bf16 %v591_v12, %v590_v11  ;;  %v1809_v15 = vld [vmem:[%s1798_s25] sm:$0xff]  ;;  %v1813_v16 = vld [vmem:[%s1798_s25 + $0x8] sm:$0xff]  ;;  %v1816_v17 = vld [vmem:[%s1798_s25 + $0x10] sm:$0xff] }
  0x12   : > { %1551 = vmatprep.mubr.msk.bf16.mxu1 %vm443_vm0, %v594_v9  ;;  %v1819_v18 = vld [vmem:[%s1798_s25 + $0x18] sm:$0xff]  ;;  %v429_v19 = vpack.c.bf16 %v1813_v16, %v1809_v15  ;;  %v1828_v21 = vld [vmem:[%s1798_s25 + $0x20] sm:$0xff]  ;;  %v1831_v22 = vld [vmem:[%s1798_s25 + $0x28] sm:$0xff] }
  0x13   : > { %1552 = vmatmul.mubr.msk.bf16.vlgmr.msra.gmra.mxu1 %vm443_vm0, %v1804_v13  ;;  %v430_v20 = vpack.c.bf16 %v1819_v18, %v1816_v17  ;;  %v592_v23 = vld [vmem:[%s404_s28 + $0x30] sm:$0xff]  ;;  %v593_v24 = vld [vmem:[%s404_s28 + $0x38] sm:$0xff]  ;;  %v431_v25 = vpack.c.bf16 %v1831_v22, %v1828_v21  ;;  %v1454_v47 = vld [vmem:[%s2115_s5] ss:$0 sm:$0xff] }
  0x14   : > { %1555 = vmatprep.mubr.msk.bf16.mxu1 %vm443_vm0, %v1806_v14  ;;  %1541 = vmatprep.mubr.msk.bf16.mxu0 %vm443_vm0, %v429_v19  ;;  %v1839_v26 = vpack.c.bf16 %v593_v24, %v592_v23  ;;  %v1843_v27 = vld [vmem:[%s1798_s25 + $0x30] sm:$0xff]  ;;  %v1846_v28 = vld [vmem:[%s1798_s25 + $0x38] sm:$0xff]  ;;  %v690_v12 = vld [vmem:[%s2116_s6] sm:$0xff]  ;;  %v1706_v23 = vmov -inf  }
  0x15   : > { %1542 = vmatmul.mubr.msk.bf16.vlgmr.msra.gmra.mxu0 %vm443_vm0, %v430_v20  ;;  %v432_v29 = vpack.c.bf16 %v1846_v28, %v1843_v27  ;;  %v691_v19 = vld [vmem:[%s2116_s6 + $0x8] sm:$0xff]  ;;  %564 = vst.msk [vmem:[#allocation3 + $0x10] sm:$0xff] %vm561_vm1, %v1706_v23  ;;  %562 = vst.msk [vmem:[#allocation3] sm:$0xff] %vm561_vm1, %v1706_v23 }
  0x16   : > { %1545 = vmatprep.mubr.msk.bf16.mxu0 %vm443_vm0, %v431_v25  ;;  %v692_v20 = vpack.c.bf16 %v691_v19, %v690_v12  ;;  %563 = vst.msk [vmem:[#allocation3 + $0x8] sm:$0xff] %vm561_vm1, %v1706_v23  ;;  %565 = vst.msk [vmem:[#allocation3 + $0x18] sm:$0xff] %vm561_vm1, %v1706_v23 }
  0x17   : > { %566 = vst.msk [vmem:[#allocation3 + $0x20] sm:$0xff] %vm561_vm1, %v1706_v23  ;;  %567 = vst.msk [vmem:[#allocation3 + $0x28] sm:$0xff] %vm561_vm1, %v1706_v23 }
  0x18   : > { %568 = vst.msk [vmem:[#allocation3 + $0x30] sm:$0xff] %vm561_vm1, %v1706_v23  ;;  %569 = vst.msk [vmem:[#allocation3 + $0x38] sm:$0xff] %vm561_vm1, %v1706_v23  ;;  %1559 = vmatprep.subr.bf16.mxu0 %v692_v20 }
  0x19   : > { %1560 = vmatpush3.bf16.msra.mxu0 %v692_v20 }
  0x1b   : > { %1556 = vmatmul.mubr.msk.bf16.gmra.mxu1 %vm443_vm0, %v1839_v26 }
  0x1d   : > { %1546 = vmatmul.mubr.msk.bf16.gmra.mxu0 %vm443_vm0, %v432_v29 }
  0x1e   : > { %1561 = vmatprep.mubr.msk.bf16.mxu0 %vm443_vm0, %v594_v9 }
  0x25   : > { %1562 = vmatmul.mubr.msk.bf16.vlgmr.msra.gmra.mxu0 %vm443_vm0, %v1804_v13 }
  0x26   : > { %1565 = vmatprep.mubr.msk.bf16.mxu0 %vm443_vm0, %v1806_v14 }
  0x2d   : > { %1566 = vmatmul.mubr.msk.bf16.gmra.mxu0 %vm443_vm0, %v1839_v26 }
  0xd3   : > { %v1553_v30 = vpop.f32.mrf.mxu1 }
  0xd4   : > { %v664_v4 = vadd.f32 %v1553_v30, %v1454_v47 }
  0xd5   : > { %v655_v31 = vpop.f32.mrf.mxu1  ;;  %v1543_v32 = vpop.f32.mrf.mxu0 }
  0xd6   : > { %v499_v37 = vadd.f32 %v1543_v32, %v1441_v33  ;;  %v656_v7 = vadd.f32 %v1454_v47, %v655_v31 }
  0xd7   : > { %v1554_v34 = vpop.f32.mrf.mxu1  ;;  %v490_v35 = vpop.f32.mrf.mxu0 }
  0xd8   : > { %v491_v40 = vadd.f32 %v1441_v33, %v490_v35  ;;  %v667_v2 = vadd.f32 %v1554_v34, %v1454_v47 }
  0xd9   : > { %v658_v36 = vpop.f32.mrf.mxu1  ;;  %v1544_v38 = vpop.f32.mrf.mxu0 }
  0xda   : > { %v502_v41 = vadd.f32 %v1544_v38, %v1441_v33  ;;  %v687_v5 = vpack.c.bf16 %v667_v2, %v664_v4  ;;  %v659_v6 = vadd.f32 %v1454_v47, %v658_v36  ;;  %v1707_v36 = vmov 0  }
  0xdb   : > { %v1557_v39 = vpop.f32.mrf.mxu1  ;;  %v493_v42 = vpop.f32.mrf.mxu0  ;;  %1629 = vset.pattern.permute.xlu1 %v1707_v36  ;;  %1628 = vset.pattern.permute.xlu0 %v1707_v36  ;;  %v1990_v36 = vld [vmem:[#allocation3 + $0x38] sm:$0xff] }
  0xdc   : > { %v1493_v44 = vpack.c.bf16 %v502_v41, %v499_v37  ;;  %v494_v45 = vadd.f32 %v1441_v33, %v493_v42  ;;  %v680_v50 = vadd.f32 %v1557_v39, %v1454_v47  ;;  %v686_v8 = vpack.c.bf16 %v659_v6, %v656_v7  ;;  %v1976_v7 = vld [vmem:[#allocation3 + $0x30] sm:$0xff] }
  0xdd   : > { %v671_v43 = vpop.f32.mrf.mxu1  ;;  %v1547_v46 = vpop.f32.mrf.mxu0  ;;  %v1708_v41 = vmov 0.0  }
  0xde   : > { %1505 = vst [vmem:[#allocation2 + $0x8] sm:$0xff] %v1493_v44   ;;  %v1488_v49 = vpack.c.bf16 %v494_v45, %v491_v40  ;;  %v515_v54 = vadd.f32 %v1547_v46, %v1441_v33  ;;  %v672_v55 = vadd.f32 %v1454_v47, %v671_v43  ;;  %572 = vst.msk [vmem:[#allocation4 + $0x10] sm:$0xff] %vm561_vm1, %v1708_v41  ;;  %v1928_v44 = vld [vmem:[#allocation3 + $0x10] sm:$0xff]  ;;  %v1930_v46 = vld [vmem:[#allocation3] sm:$0xff] }
  0xdf   : > { %v1558_v48 = vpop.f32.mrf.mxu1  ;;  %v506_v52 = vpop.f32.mrf.mxu0  ;;  %570 = vst.msk [vmem:[#allocation4] sm:$0xff] %vm561_vm1, %v1708_v41  ;;  %571 = vst.msk [vmem:[#allocation4 + $0x8] sm:$0xff] %vm561_vm1, %v1708_v41 }
  0xe0   : > { %v683_v51 = vadd.f32 %v1558_v48, %v1454_v47  ;;  %1489 = vst [vmem:[#allocation2] sm:$0xff] %v1488_v49   ;;  %v507_v59 = vadd.f32 %v1441_v33, %v506_v52  ;;  %573 = vst.msk [vmem:[#allocation4 + $0x18] sm:$0xff] %vm561_vm1, %v1708_v41 }
  0xe1   : > { %v674_v53 = vpop.f32.mrf.mxu1  ;;  %v1548_v58 = vpop.f32.mrf.mxu0  ;;  %574 = vst.msk [vmem:[#allocation4 + $0x20] sm:$0xff] %vm561_vm1, %v1708_v41  ;;  %575 = vst.msk [vmem:[#allocation4 + $0x28] sm:$0xff] %vm561_vm1, %v1708_v41 }
  0xe2   : > { %v689_v56 = vpack.c.bf16 %v683_v51, %v680_v50  ;;  %v675_v57 = vadd.f32 %v1454_v47, %v674_v53  ;;  %v518_v60 = vadd.f32 %v1548_v58, %v1441_v33  ;;  %576 = vst.msk [vmem:[#allocation4 + $0x30] sm:$0xff] %vm561_vm1, %v1708_v41  ;;  %577 = vst.msk [vmem:[#allocation4 + $0x38] sm:$0xff] %vm561_vm1, %v1708_v41  ;;  %v1935_v50 = vld [vmem:[#allocation3 + $0x18] sm:$0xff] }
  0xe3   : > { %v509_v62 = vpop.f32.mrf.mxu0  ;;  %578 = vst.msk [vmem:[#allocation5] sm:$0xff] %vm443_vm0, %v1708_v41  ;;  %579 = vst.msk [vmem:[#allocation5 + $0x8] sm:$0xff] %vm443_vm0, %v1708_v41 }
  0xe4   : > { %v688_v61 = vpack.c.bf16 %v675_v57, %v672_v55  ;;  %1569 = vmatprep.subr.bf16.mxu1 %v689_v56  ;;  %v1503_v63 = vpack.c.bf16 %v518_v60, %v515_v54  ;;  %v510_v0 = vadd.f32 %v1441_v33, %v509_v62  ;;  %580 = vst.msk [vmem:[#allocation5 + $0x10] sm:$0xff] %vm443_vm0, %v1708_v41  ;;  %581 = vst.msk [vmem:[#allocation5 + $0x18] sm:$0xff] %vm443_vm0, %v1708_v41  ;;  %v1945_v55 = vld [vmem:[#allocation3 + $0x8] sm:$0xff]  ;;  %v1459_v60 = vld [vmem:[%s2117_s7] ss:$0 sm:$0xff] }
  0xe5   : > { %1570 = vmatpush3.bf16.xpose.msra.mxu1 %v689_v56  ;;  %v1631_v10 = vld [vmem:[#allocation2 + $0x8] sm:$0xff]   ;;  %582 = vst.msk [vmem:[#allocation5 + $0x20] sm:$0xff] %vm443_vm0, %v1708_v41  ;;  %583 = vst.msk [vmem:[#allocation5 + $0x28] sm:$0xff] %vm443_vm0, %v1708_v41  ;;  %v1563_v42 = vpop.f32.mrf.mxu0 }
  0xe6   : > { %1571 = vmatprep.subr.bf16.mxu1 %v688_v61  ;;  %1507 = vst [vmem:[#allocation2 + $0x18] sm:$0xff] %v1503_v63   ;;  %v1498_v1 = vpack.c.bf16 %v510_v0, %v507_v59  ;;  %584 = vst.msk [vmem:[#allocation5 + $0x30] sm:$0xff] %vm443_vm0, %v1708_v41  ;;  %v1966_v0 = vld [vmem:[#allocation3 + $0x20] sm:$0xff] }
  0xe7   : > { %v1630_v3 = vld [vmem:[#allocation2] sm:$0xff]   ;;  %585 = vst.msk [vmem:[#allocation5 + $0x38] sm:$0xff] %vm443_vm0, %v1708_v41  ;;  %v734_v43 = vpop.f32.mrf.mxu0 }
  0xe8   : > { %1506 = vst [vmem:[#allocation2 + $0x10] sm:$0xff] %v1498_v1   ;;  %1577 = vmatprep.mubr.bf16.mxu1 %v1630_v3 }
  0xe9   : > { %v1564_v47 = vpop.f32.mrf.mxu0 }
  0xeb   : > { %v737_v51 = vpop.f32.mrf.mxu0 }
  0xed   : > { %1572 = vmatpush3.bf16.xpose.msra.mxu1 %v688_v61  ;;  %v1633_v11 = vld [vmem:[#allocation2 + $0x18] sm:$0xff]   ;;  %v1567_v56 = vpop.f32.mrf.mxu0 }
  0xee   : > { %1573 = vmatprep.subr.bf16.mxu1 %v687_v5  ;;  %v759_v3 = vadd.f32 %v1567_v56, %v1459_v60 }
  0xef   : > { %v1632_v9 = vld [vmem:[#allocation2 + $0x10] sm:$0xff]   ;;  %v750_v61 = vpop.f32.mrf.mxu0 }
  0xf0   : > { %v751_v20 = vadd.f32 %v1459_v60, %v750_v61 }
  0xf1   : > { %v1568_v1 = vpop.f32.mrf.mxu0 }
  0xf3   : > { %v753_v12 = vpop.f32.mrf.mxu0 }
  0xf4   : > { %v754_v23 = vadd.f32 %v1459_v60, %v753_v12 }
  0xf5   : > { %1574 = vmatpush3.bf16.xpose.msra.mxu1 %v687_v5  ;;  %v762_v5 = vadd.f32 %v1568_v1, %v1459_v60 }
  0xf6   : > { %1575 = vmatprep.subr.bf16.mxu1 %v686_v8 }
  0xfd   : > { %1576 = vmatpush3.bf16.xpose.msra.mxu1 %v686_v8  ;;  %v1978_v8 = vld [vmem:[#allocation3 + $0x28] sm:$0xff] }
 0x104   : > { %1578 = vmatmul.mubr.bf16.vlgmr.msra.gmra.mxu1 %v1631_v10  ;;  %v746_v10 = vadd.f32 %v1564_v47, %v1459_v60 }
 0x105   : > { %1581 = vmatprep.mubr.bf16.mxu1 %v1632_v9  ;;  %v743_v9 = vadd.f32 %v1563_v42, %v1459_v60 }
 0x10c   : > { %1582 = vmatmul.mubr.bf16.gmra.mxu1 %v1633_v11  ;;  %v768_v11 = vpack.c.bf16 %v762_v5, %v759_v3 }
 0x10e   : > { %1585 = vmatprep.subr.bf16.mxu0 %v768_v11 }
 0x10f   : > { %1586 = vmatpush3.bf16.msra.mxu0 %v768_v11 }
 0x1c4   : > { %v1880_v24 = vpop.f32.mrf.mxu1 }
 0x1c5   : > { %v881_v25 = vsel %vm874_vm2, %v1880_v24, -inf }
 0x1c6   : > { %882 = vmax.xlane.f32.xlu1 %v881_v25  ;;  %v1884_v29 = vpop.f32.mrf.mxu1 }
 0x1c7   : > { %v875_v30 = vsel %vm874_vm2, %v1884_v29, -inf }
 0x1c8   : > { %876 = vmax.xlane.f32.xlu0 %v875_v30  ;;  %v1888_v13 = vpop.f32.mrf.mxu1 }
 0x1c9   : > { %v884_v14 = vsel %vm874_vm2, %v1888_v13, -inf }
 0x1ca   : > { %885 = vmax.xlane.f32.xlu1 %v884_v14  ;;  %v1892_v26 = vpop.f32.mrf.mxu1 }
 0x1cb   : > { %v878_v31 = vsel %vm874_vm2, %v1892_v26, -inf }
 0x1cc   : > { %879 = vmax.xlane.f32.xlu0 %v878_v31  ;;  %v1896_v32 = vpop.f32.mrf.mxu1 }
 0x1cd   : > { %v893_v38 = vsel %vm874_vm2, %v1896_v32, -inf }
 0x1ce   : > { %v1898_v33 = vpop.f32.mrf.mxu1 }
 0x1cf   : > { %v887_v34 = vsel %vm874_vm2, %v1898_v33, -inf }
 0x1d0   : > { %888 = vmax.xlane.f32.xlu0 %v887_v34  ;;  %v1902_v35 = vpop.f32.mrf.mxu1  ;;  %v767_v34 = vpack.c.bf16 %v754_v23, %v751_v20 }
 0x1d1   : > { %v896_v40 = vsel %vm874_vm2, %v1902_v35, -inf }
 0x1d2   : > { %v1904_v37 = vpop.f32.mrf.mxu1  ;;  %1587 = vmatprep.subr.bf16.mxu0 %v767_v34 }
 0x1d3   : > { %v890_v39 = vsel %vm874_vm2, %v1904_v37, -inf  ;;  %1588 = vmatpush3.bf16.msra.mxu0 %v767_v34 }
 0x1d4   : > { %894 = vmax.xlane.f32.xlu0 %v893_v38  ;;  %891 = vmax.xlane.f32.xlu1 %v890_v39  ;;  %v735_v38 = vadd.f32 %v1459_v60, %v734_v43  ;;  %v766_v39 = vpack.c.bf16 %v746_v10, %v743_v9 }
 0x1d6   : > { %1589 = vmatprep.subr.bf16.mxu0 %v766_v39 }
 0x1d7   : > { %1590 = vmatpush3.bf16.msra.mxu0 %v766_v39 }
 0x1d8   : > { %897 = vmax.xlane.f32.xlu1 %v896_v40  ;;  %v738_v40 = vadd.f32 %v1459_v60, %v737_v51 }
 0x1da   : > { %v765_v47 = vpack.c.bf16 %v738_v40, %v735_v38 }
 0x1dc   : > { %1591 = vmatprep.subr.bf16.mxu0 %v765_v47 }
 0x1dd   : > { %1592 = vmatpush3.bf16.msra.mxu0 %v765_v47 }
 0x24f   : > { %v883_v45 = vpop.xlane.xlu1 %882 }
 0x250   : > { %v1933_v48 = vmax.f32 %v1928_v44, %v883_v45 }
 0x251   : > { %v877_v49 = vpop.xlane.xlu0 %876 }
 0x252   : > { %v909_v52 = vsub.f32 %v1928_v44, %v1933_v48  ;;  %1207 = vst.msk [vmem:[#allocation3 + $0x10] sm:$0xff] %vm561_vm1, %v1933_v48  ;;  %v1942_v53 = vmax.f32 %v1930_v46, %v877_v49  ;;  %943 = vperm.xlu1 %1629, %v1933_v48  }
 0x253   : > { %v886_v54 = vpop.xlane.xlu1 %885 }
 0x254   : > { %v907_v57 = vsub.f32 %v1930_v46, %v1942_v53  ;;  %1205 = vst.msk [vmem:[#allocation3] sm:$0xff] %vm561_vm1, %v1942_v53  ;;  %v1952_v58 = vmax.f32 %v1935_v50, %v886_v54  ;;  %933 = vperm.xlu0 %1628, %v1942_v53  }
 0x255   : > { %v880_v59 = vpop.xlane.xlu0 %879 }
 0x256   : > { %v910_v62 = vsub.f32 %v1935_v50, %v1952_v58  ;;  %1208 = vst.msk [vmem:[#allocation3 + $0x18] sm:$0xff] %vm561_vm1, %v1952_v58  ;;  %v1963_v63 = vmax.f32 %v1945_v55, %v880_v59  ;;  %948 = vperm.xlu1 %1629, %v1952_v58  }
 0x258   : > { %v908_v2 = vsub.f32 %v1945_v55, %v1963_v63  ;;  %1206 = vst.msk [vmem:[#allocation3 + $0x8] sm:$0xff] %vm561_vm1, %v1963_v63  ;;  %v921_v55 = vmul.f32 1.442695, %v910_v62 }
 0x259   : > { %v889_v4 = vpop.xlane.xlu0 %888 }
 0x25a   : > { %v1973_v6 = vmax.f32 %v1966_v0, %v889_v4  ;;  %938 = vperm.xlu1 %1629, %v1963_v63  }
 0x25c   : > { %v911_v19 = vsub.f32 %v1966_v0, %v1973_v6  ;;  %1209 = vst.msk [vmem:[#allocation3 + $0x20] sm:$0xff] %vm561_vm1, %v1973_v6 }
 0x25d   : > { %v895_v25 = vpop.xlane.xlu0 %894  ;;  %v892_v30 = vpop.xlane.xlu1 %891 }
 0x25e   : > { %v1985_v14 = vmax.f32 %v1976_v7, %v895_v25  ;;  %v1988_v31 = vmax.f32 %v1978_v8, %v892_v30  ;;  %v923_v63 = vmul.f32 1.442695, %v911_v19 }
 0x260   : > { %v913_v41 = vsub.f32 %v1976_v7, %v1985_v14  ;;  %1211 = vst.msk [vmem:[#allocation3 + $0x30] sm:$0xff] %vm561_vm1, %v1985_v14  ;;  %v912_v42 = vsub.f32 %v1978_v8, %v1988_v31  ;;  %1210 = vst.msk [vmem:[#allocation3 + $0x28] sm:$0xff] %vm561_vm1, %v1988_v31  ;;  %963 = vperm.xlu1 %1629, %v1985_v14   ;;  %v995_v7 = vld [vmem:[#allocation4] sm:$0xff] }
 0x261   : > { %v898_v45 = vpop.xlane.xlu1 %897 }
 0x262   : > { %v2002_v43 = vmax.f32 %v1990_v36, %v898_v45  ;;  %v925_v46 = vmul.f32 1.442695, %v912_v42  ;;  %v927_v44 = vmul.f32 1.442695, %v913_v41  ;;  %v998_v41 = vld [vmem:[#allocation4 + $0x18] sm:$0xff] }
 0x264   : > { %v914_v49 = vsub.f32 %v1990_v36, %v2002_v43  ;;  %1212 = vst.msk [vmem:[#allocation3 + $0x38] sm:$0xff] %vm561_vm1, %v2002_v43  ;;  %953 = vperm.xlu1 %1629, %v1973_v6   ;;  %v997_v6 = vld [vmem:[#allocation4 + $0x10] sm:$0xff] }
 0x266   : > { %v929_v48 = vmul.f32 1.442695, %v914_v49 }
 0x268   : > { %958 = vperm.xlu1 %1629, %v1988_v31  }
 0x26c   : > { %968 = vperm.xlu1 %1629, %v2002_v43   ;;  %v996_v43 = vld [vmem:[#allocation4 + $0x8] sm:$0xff] }
 0x2cd   : > { %v944_v51 = vpop.permute.xlu1 %943 }
 0x2ce   : > { %v973_v54 = vsub.f32 %v1880_v24, %v944_v51 }
 0x2cf   : > { %v934_v56 = vpop.permute.xlu0 %933 }
 0x2d0   : > { %v983_v59 = vmul.f32 1.442695, %v973_v54  ;;  %v971_v60 = vsub.f32 %v1884_v29, %v934_v56 }
 0x2d1   : > { %v949_v61 = vpop.permute.xlu1 %948 }
 0x2d2   : > { %1634 = vpow2.f32 %v983_v59  ;;  %v979_v1 = vmul.f32 1.442695, %v971_v60  ;;  %v974_v3 = vsub.f32 %v1888_v13, %v949_v61 }
 0x2d4   : > { %1636 = vpow2.f32 %v979_v1  ;;  %v985_v4 = vmul.f32 1.442695, %v974_v3 }
 0x2d5   : > { %v939_v5 = vpop.permute.xlu1 %938 }
 0x2d6   : > { %1638 = vpow2.f32 %v985_v4  ;;  %v972_v9 = vsub.f32 %v1892_v26, %v939_v5 }
 0x2d8   : > { %v981_v10 = vmul.f32 1.442695, %v972_v9  ;;  %v917_v9 = vmul.f32 1.442695, %v908_v2 }
 0x2da   : > { %1640 = vpow2.f32 %v981_v10 }
 0x2db   : > { %v964_v11 = vpop.permute.xlu1 %963 }
 0x2dc   : > { %v977_v24 = vsub.f32 %v1896_v32, %v964_v11 }
 0x2de   : > { %v991_v13 = vmul.f32 1.442695, %v977_v24  ;;  %v915_v24 = vmul.f32 1.442695, %v907_v57 }
 0x2df   : > { %v1635_v12 = vpop.eup %1634  ;;  %v954_v20 = vpop.permute.xlu1 %953 }
 0x2e0   : > { %v975_v29 = vsub.f32 %v1898_v33, %v954_v20  ;;  %v1017_v23 = vsel %vm874_vm2, %v1635_v12, 0.0 }
 0x2e1   : > { %v1637_v25 = vpop.eup %1636  ;;  %1018 = vadd.xlane.f32.xlu0 %v1017_v23 }
 0x2e2   : > { %v987_v30 = vmul.f32 1.442695, %v975_v29  ;;  %v1011_v34 = vsel %vm874_vm2, %v1637_v25, 0.0 }
 0x2e3   : > { %v1639_v38 = vpop.eup %1638  ;;  %1012 = vadd.xlane.f32.xlu1 %v1011_v34  ;;  %v959_v26 = vpop.permute.xlu1 %958 }
 0x2e4   : > { %1642 = vpow2.f32 %v987_v30  ;;  %v976_v39 = vsub.f32 %v1904_v37, %v959_v26  ;;  %v1020_v40 = vsel %vm874_vm2, %v1639_v38, 0.0  ;;  %v1109_v56 = vpack.c.bf16 %v1639_v38, %v1635_v12  ;;  %v999_v38 = vld [vmem:[#allocation4 + $0x20] sm:$0xff] }
 0x2e5   : > { %1644 = vpow2.f32 %v991_v13  ;;  %v919_v12 = vmul.f32 1.442695, %v909_v52 }
 0x2e6   : > { %v989_v32 = vmul.f32 1.442695, %v976_v39 }
 0x2e7   : > { %v1641_v45 = vpop.eup %1640  ;;  %1021 = vadd.xlane.f32.xlu1 %v1020_v40  ;;  %v969_v33 = vpop.permute.xlu1 %968  ;;  %v1001_v40 = vld [vmem:[#allocation4 + $0x30] sm:$0xff] }
 0x2e8   : > { %1646 = vpow2.f32 %v989_v32  ;;  %v978_v47 = vsub.f32 %v1902_v35, %v969_v33  ;;  %v1014_v51 = vsel %vm874_vm2, %v1641_v45, 0.0  ;;  %v1108_v54 = vpack.c.bf16 %v1641_v45, %v1637_v25  ;;  %v1000_v45 = vld [vmem:[#allocation4 + $0x28] sm:$0xff] }
 0x2e9   : > { %1015 = vadd.xlane.f32.xlu0 %v1014_v51 }
 0x2ea   : > { %v993_v59 = vmul.f32 1.442695, %v978_v47  ;;  %1593 = vmatprep.mubr.msk.bf16.mxu0 %vm874_vm2, %v1108_v54 }
 0x2eb   : > { %1594 = vmatmul.mubr.msk.bf16.vlgmr.msra.gmra.mxu0 %vm874_vm2, %v1109_v56 }
 0x2ec   : > { %1648 = vpow2.f32 %v993_v59 }
 0x2ed   : > { %1650 = vpow2.f32 %v917_v9 }
 0x2ee   : > { %1652 = vpow2.f32 %v915_v24 }
 0x2ef   : > { %1654 = vpow2.f32 %v919_v12 }
 0x2f0   : > { %1656 = vpow2.f32 %v921_v55 }
 0x2f1   : > { %v1643_v37 = vpop.eup %1642  ;;  %1658 = vpow2.f32 %v923_v63 }
 0x2f2   : > { %v1023_v60 = vsel %vm874_vm2, %v1643_v37, 0.0  ;;  %v1645_v61 = vpop.eup %1644  ;;  %1660 = vpow2.f32 %v925_v46 }
 0x2f3   : > { %1024 = vadd.xlane.f32.xlu0 %v1023_v60  ;;  %v1029_v3 = vsel %vm874_vm2, %v1645_v61, 0.0  ;;  %1662 = vpow2.f32 %v927_v44 }
 0x2f4   : > { %1664 = vpow2.f32 %v929_v48 }
 0x2f5   : > { %v1647_v1 = vpop.eup %1646 }
 0x2f6   : > { %v1026_v35 = vsel %vm874_vm2, %v1647_v1, 0.0  ;;  %v1110_v4 = vpack.c.bf16 %v1647_v1, %v1643_v37  ;;  %v1002_v37 = vld [vmem:[#allocation4 + $0x38] sm:$0xff] }
 0x2f7   : > { %1030 = vadd.xlane.f32.xlu0 %v1029_v3  ;;  %1027 = vadd.xlane.f32.xlu1 %v1026_v35 }
 0x2f8   : > { %1597 = vmatprep.mubr.msk.bf16.mxu0 %vm874_vm2, %v1110_v4 }
 0x2f9   : > { %v1649_v5 = vpop.eup %1648 }
 0x2fa   : > { %v1032_v10 = vsel %vm874_vm2, %v1649_v5, 0.0  ;;  %v1111_v11 = vpack.c.bf16 %v1649_v5, %v1645_v61  ;;  %v1651_v50 = vpop.eup %1650 }
 0x2fb   : > { %1033 = vadd.xlane.f32.xlu1 %v1032_v10  ;;  %v1653_v52 = vpop.eup %1652  ;;  %v1004_v23 = vmul.f32 %v1651_v50, %v996_v43 }
 0x2fc   : > { %1598 = vmatmul.mubr.msk.bf16.gmra.mxu0 %vm874_vm2, %v1111_v11  ;;  %v1655_v53 = vpop.eup %1654  ;;  %v1003_v31 = vmul.f32 %v1653_v52, %v995_v7 }
 0x2fd   : > { %v1657_v57 = vpop.eup %1656  ;;  %v1005_v8 = vmul.f32 %v1655_v53, %v997_v6 }
 0x2fe   : > { %v1659_v58 = vpop.eup %1658  ;;  %v1006_v49 = vmul.f32 %v1657_v57, %v998_v41 }
 0x2ff   : > { %v1661_v62 = vpop.eup %1660  ;;  %v1007_v39 = vmul.f32 %v1659_v58, %v999_v38  ;;  %v1059_v38 = vld [vmem:[#allocation5 + $0x38] sm:$0xff] }
 0x300   : > { %v1663_v0 = vpop.eup %1662  ;;  %v1008_v54 = vmul.f32 %v1661_v62, %v1000_v45  ;;  %v1057_v45 = vld [vmem:[#allocation5 + $0x28] sm:$0xff] }
 0x301   : > { %v1665_v2 = vpop.eup %1664  ;;  %v1009_v51 = vmul.f32 %v1663_v0, %v1001_v40 }
 0x302   : > { %v1010_v3 = vmul.f32 %v1665_v2, %v1002_v37 }
 0x30c   : > { %1067 = vperm.xlu1 %1629, %v1651_v50  }
 0x30d   : > { %1062 = vperm.xlu0 %1628, %v1653_v52  }
 0x310   : > { %1072 = vperm.xlu1 %1629, %v1655_v53   ;;  %v1054_v53 = vld [vmem:[#allocation5 + $0x10] sm:$0xff] }
 0x311   : > { %1077 = vperm.xlu0 %1628, %v1657_v57  }
 0x314   : > { %1082 = vperm.xlu1 %1629, %v1659_v58   ;;  %v1052_v58 = vld [vmem:[#allocation5] sm:$0xff] }
 0x315   : > { %1087 = vperm.xlu0 %1628, %v1661_v62  }
 0x318   : > { %1092 = vperm.xlu1 %1629, %v1663_v0   ;;  %v1055_v0 = vld [vmem:[#allocation5 + $0x18] sm:$0xff] }
 0x319   : > { %1097 = vperm.xlu0 %1628, %v1665_v2  }
 0x36a   : > { %v1019_v19 = vpop.xlane.xlu0 %1018 }
 0x36b   : > { %v1037_v14 = vadd.f32 %v1019_v19, %v1005_v8  ;;  %v1053_v19 = vld [vmem:[#allocation5 + $0x8] sm:$0xff] }
 0x36c   : > { %v1013_v36 = vpop.xlane.xlu1 %1012 }
 0x36d   : > { %1046 = vst.msk [vmem:[#allocation4 + $0x10] sm:$0xff] %vm561_vm1, %v1037_v14  ;;  %v1035_v42 = vadd.f32 %v1013_v36, %v1003_v31 }
 0x36f   : > { %1044 = vst.msk [vmem:[#allocation4] sm:$0xff] %vm561_vm1, %v1035_v42 }
 0x370   : > { %v1022_v20 = vpop.xlane.xlu1 %1021 }
 0x371   : > { %v1038_v29 = vadd.f32 %v1022_v20, %v1006_v49 }
 0x372   : > { %v1016_v25 = vpop.xlane.xlu0 %1015 }
 0x373   : > { %1047 = vst.msk [vmem:[#allocation4 + $0x18] sm:$0xff] %vm561_vm1, %v1038_v29  ;;  %v1036_v13 = vadd.f32 %v1016_v25, %v1004_v23  ;;  %v1058_v25 = vld [vmem:[#allocation5 + $0x30] sm:$0xff] }
 0x374   : > { %v1226_v30 = vld [vmem:[#allocation4 + $0x10] sm:$0xff] }
 0x375   : > { %1045 = vst.msk [vmem:[#allocation4 + $0x8] sm:$0xff] %vm561_vm1, %v1036_v13  ;;  %1666 = vrcp.f32 %v1226_v30  ;;  %v1056_v30 = vld [vmem:[#allocation5 + $0x20] sm:$0xff] }
 0x376   : > { %v1224_v34 = vld [vmem:[#allocation4] sm:$0xff] }
 0x377   : > { %1668 = vrcp.f32 %v1224_v34 }
 0x37a   : > { %v1227_v26 = vld [vmem:[#allocation4 + $0x18] sm:$0xff] }
 0x37b   : > { %1670 = vrcp.f32 %v1227_v26 }
 0x37c   : > { %v1025_v32 = vpop.xlane.xlu0 %1024  ;;  %v1225_v33 = vld [vmem:[#allocation4 + $0x8] sm:$0xff] }
 0x37d   : > { %v1039_v47 = vadd.f32 %v1025_v32, %v1007_v39  ;;  %1672 = vrcp.f32 %v1225_v33 }
 0x37f   : > { %1048 = vst.msk [vmem:[#allocation4 + $0x20] sm:$0xff] %vm561_vm1, %v1039_v47 }
 0x380   : > { %v1031_v56 = vpop.xlane.xlu0 %1030  ;;  %v1028_v59 = vpop.xlane.xlu1 %1027 }
 0x381   : > { %v1041_v60 = vadd.f32 %v1031_v56, %v1009_v51  ;;  %v1040_v61 = vadd.f32 %v1028_v59, %v1008_v54 }
 0x382   : > { %v1667_v1 = vpop.eup %1666 }
 0x383   : > { %1050 = vst.msk [vmem:[#allocation4 + $0x30] sm:$0xff] %vm561_vm1, %v1041_v60  ;;  %1049 = vst.msk [vmem:[#allocation4 + $0x28] sm:$0xff] %vm561_vm1, %v1040_v61  ;;  %1252 = vperm.xlu1 %1629, %v1667_v1   ;;  %v1289_v1 = vstv %s1288_s20 }
 0x384   : > { %v1034_v35 = vpop.xlane.xlu1 %1033  ;;  %v1669_v5 = vpop.eup %1668 }
 0x385   : > { %v1042_v4 = vadd.f32 %v1034_v35, %v1010_v3 }
 0x386   : > { %v1228_v9 = vld [vmem:[#allocation4 + $0x20] sm:$0xff] }
 0x387   : > { %1051 = vst.msk [vmem:[#allocation4 + $0x38] sm:$0xff] %vm561_vm1, %v1042_v4  ;;  %1242 = vperm.xlu1 %1629, %v1669_v5   ;;  %1674 = vrcp.f32 %v1228_v9 }
 0x388   : > { %v1671_v10 = vpop.eup %1670  ;;  %v1068_v50 = vpop.permute.xlu1 %1067 }
 0x389   : > { %1257 = vperm.xlu0 %1628, %v1671_v10   ;;  %v1063_v52 = vpop.permute.xlu0 %1062  ;;  %v1101_v42 = vmul.f32 %v1068_v50, %v1053_v19 }
 0x38a   : > { %v1230_v11 = vld [vmem:[#allocation4 + $0x30] sm:$0xff]  ;;  %v1229_v24 = vld [vmem:[#allocation4 + $0x28] sm:$0xff]  ;;  %v1673_v12 = vpop.eup %1672  ;;  %v1100_v7 = vmul.f32 %v1063_v52, %v1052_v58 }
 0x38b   : > { %1676 = vrcp.f32 %v1230_v11 }
 0x38c   : > { %1678 = vrcp.f32 %v1229_v24  ;;  %v1073_v57 = vpop.permute.xlu1 %1072 }
 0x38d   : > { %1247 = vperm.xlu0 %1628, %v1673_v12   ;;  %v1102_v62 = vmul.f32 %v1073_v57, %v1054_v53  ;;  %v1078_v2 = vpop.permute.xlu0 %1077 }
 0x38e   : > { %v1231_v55 = vld [vmem:[#allocation4 + $0x38] sm:$0xff]  ;;  %v1103_v31 = vmul.f32 %v1078_v2, %v1055_v0 }
 0x38f   : > { %1680 = vrcp.f32 %v1231_v55 }
 0x390   : > { %v1083_v20 = vpop.permute.xlu1 %1082 }
 0x391   : > { %v1088_v23 = vpop.permute.xlu0 %1087  ;;  %v1104_v32 = vmul.f32 %v1083_v20, %v1056_v30 }
 0x392   : > { %v1105_v56 = vmul.f32 %v1088_v23, %v1057_v45 }
 0x394   : > { %v1675_v63 = vpop.eup %1674  ;;  %v1093_v13 = vpop.permute.xlu1 %1092 }
 0x395   : > { %1262 = vperm.xlu1 %1629, %v1675_v63   ;;  %v1106_v34 = vmul.f32 %v1093_v13, %v1058_v25  ;;  %v1098_v26 = vpop.permute.xlu0 %1097 }
 0x396   : > { %v1107_v47 = vmul.f32 %v1098_v26, %v1059_v38 }
 0x398   : > { %v1677_v46 = vpop.eup %1676 }
 0x399   : > { %v1679_v44 = vpop.eup %1678  ;;  %1272 = vperm.xlu1 %1629, %v1677_v46  }
 0x39a   : > { %1267 = vperm.xlu0 %1628, %v1679_v44  }
 0x39c   : > { %v1681_v48 = vpop.eup %1680 }
 0x39e   : > { %1277 = vperm.xlu0 %1628, %v1681_v48  }
 0x3ab   : > { %v1595_v6 = vpop.f32.mrf.mxu0 }
 0x3ac   : > { %v1191_v8 = vadd.f32 %v1595_v6, %v1102_v62 }
 0x3ad   : > { %v1158_v14 = vpop.f32.mrf.mxu0 }
 0x3ae   : > { %1199 = vst.msk [vmem:[#allocation5 + $0x10] sm:$0xff] %vm443_vm0, %v1191_v8  ;;  %v1189_v36 = vadd.f32 %v1158_v14, %v1100_v7 }
 0x3af   : > { %v1596_v41 = vpop.f32.mrf.mxu0 }
 0x3b0   : > { %1197 = vst.msk [vmem:[#allocation5] sm:$0xff] %vm443_vm0, %v1189_v36  ;;  %v1192_v43 = vadd.f32 %v1596_v41, %v1103_v31 }
 0x3b1   : > { %v1161_v49 = vpop.f32.mrf.mxu0 }
 0x3b2   : > { %1200 = vst.msk [vmem:[#allocation5 + $0x18] sm:$0xff] %vm443_vm0, %v1192_v43  ;;  %v1190_v29 = vadd.f32 %v1161_v49, %v1101_v42 }
 0x3b4   : > { %1198 = vst.msk [vmem:[#allocation5 + $0x8] sm:$0xff] %vm443_vm0, %v1190_v29 }
 0x3b5   : > { %v1218_v61 = vld [vmem:[#allocation5 + $0x10] sm:$0xff] }
 0x3b7   : > { %v1216_v5 = vld [vmem:[#allocation5] sm:$0xff] }
 0x3b9   : > { %v1219_v24 = vld [vmem:[#allocation5 + $0x18] sm:$0xff] }
 0x3bb   : > { %v1217_v50 = vld [vmem:[#allocation5 + $0x8] sm:$0xff] }
 0x3bc   : > { %v1599_v39 = vpop.f32.mrf.mxu0 }
 0x3bd   : > { %v1195_v40 = vadd.f32 %v1599_v39, %v1106_v34 }
 0x3be   : > { %v1174_v33 = vpop.f32.mrf.mxu0 }
 0x3bf   : > { %1203 = vst.msk [vmem:[#allocation5 + $0x30] sm:$0xff] %vm443_vm0, %v1195_v40  ;;  %v1193_v51 = vadd.f32 %v1174_v33, %v1104_v32 }
 0x3c0   : > { %v1600_v54 = vpop.f32.mrf.mxu0 }
 0x3c1   : > { %1201 = vst.msk [vmem:[#allocation5 + $0x20] sm:$0xff] %vm443_vm0, %v1193_v51  ;;  %v1196_v59 = vadd.f32 %v1600_v54, %v1107_v47 }
 0x3c2   : > { %v1177_v37 = vpop.f32.mrf.mxu0 }
 0x3c3   : > { %1204 = vst.msk [vmem:[#allocation5 + $0x38] sm:$0xff] %vm443_vm0, %v1196_v59  ;;  %v1194_v60 = vadd.f32 %v1177_v37, %v1105_v56 }
 0x3c5   : > { %1202 = vst.msk [vmem:[#allocation5 + $0x28] sm:$0xff] %vm443_vm0, %v1194_v60 }
 0x3c6   : > { %v1222_v2 = vld [vmem:[#allocation5 + $0x30] sm:$0xff] }
 0x3c8   : > { %v1220_v58 = vld [vmem:[#allocation5 + $0x20] sm:$0xff] }
 0x3ca   : > { %v1223_v41 = vld [vmem:[#allocation5 + $0x38] sm:$0xff] }
 0x3fe   : > { %v1253_v3 = vpop.permute.xlu1 %1252 }
 0x3ff   : > { %v1282_v35 = vmul.f32 %v1253_v3, %v1218_v61 }
 0x401   : > { %v1292_v4 = vmul.f32 %v1289_v1, %v1282_v35 }
 0x402   : > { %v1243_v9 = vpop.permute.xlu1 %1242 }
 0x403   : > { %v1308_v10 = vadd.f32 %v1292_v4, %v1816_v17  ;;  %v1280_v11 = vmul.f32 %v1243_v9, %v1216_v5 }
 0x404   : > { %v1258_v12 = vpop.permute.xlu0 %1257 }
 0x405   : > { %1316 = vst.msk [vmem:[%s2075_s24 + $0x10] sm:$0xff] %vm443_vm0, %v1308_v10  ;;  %v1290_v55 = vmul.f32 %v1289_v1, %v1280_v11  ;;  %v1283_v63 = vmul.f32 %v1258_v12, %v1219_v24 }
 0x407   : > { %v1306_v46 = vadd.f32 %v1290_v55, %v1809_v15  ;;  %v1293_v44 = vmul.f32 %v1289_v1, %v1283_v63 }
 0x408   : > { %v1248_v48 = vpop.permute.xlu0 %1247 }
 0x409   : > { %1314 = vst.msk [vmem:[%s2075_s24] sm:$0xff] %vm443_vm0, %v1306_v46  ;;  %v1309_v52 = vadd.f32 %v1293_v44, %v1819_v18  ;;  %v1281_v53 = vmul.f32 %v1248_v48, %v1217_v50  ;;  %v1221_v18 = vld [vmem:[#allocation5 + $0x28] sm:$0xff] }
 0x40b   : > { %1317 = vst.msk [vmem:[%s2075_s24 + $0x18] sm:$0xff] %vm443_vm0, %v1309_v52  ;;  %v1291_v17 = vmul.f32 %v1289_v1, %v1281_v53 }
 0x40d   : > { %v1307_v57 = vadd.f32 %v1291_v17, %v1813_v16 }
 0x40f   : > { %1315 = vst.msk [vmem:[%s2075_s24 + $0x8] sm:$0xff] %vm443_vm0, %v1307_v57 }
 0x410   : > { %v1263_v62 = vpop.permute.xlu1 %1262 }
 0x411   : > { %v1284_v0 = vmul.f32 %v1263_v62, %v1220_v58 }
 0x413   : > { %v1294_v15 = vmul.f32 %v1289_v1, %v1284_v0 }
 0x414   : > { %v1273_v6 = vpop.permute.xlu1 %1272 }
 0x415   : > { %v1310_v7 = vadd.f32 %v1294_v15, %v1828_v21  ;;  %v1268_v8 = vpop.permute.xlu0 %1267  ;;  %v1286_v19 = vmul.f32 %v1273_v6, %v1222_v2 }
 0x416   : > { %v1285_v14 = vmul.f32 %v1268_v8, %v1221_v18 }
 0x417   : > { %1318 = vst.msk [vmem:[%s2075_s24 + $0x20] sm:$0xff] %vm443_vm0, %v1310_v7  ;;  %v1296_v16 = vmul.f32 %v1289_v1, %v1286_v19 }
 0x418   : > { %v1295_v31 = vmul.f32 %v1289_v1, %v1285_v14 }
 0x419   : > { %v1312_v36 = vadd.f32 %v1296_v16, %v1843_v27  ;;  %v1278_v42 = vpop.permute.xlu0 %1277 }
 0x41a   : > { %v1311_v43 = vadd.f32 %v1295_v31, %v1831_v22  ;;  %v1287_v49 = vmul.f32 %v1278_v42, %v1223_v41 }
 0x41b   : > { %1320 = vst.msk [vmem:[%s2075_s24 + $0x30] sm:$0xff] %vm443_vm0, %v1312_v36 }
 0x41c   : > { %1319 = vst.msk [vmem:[%s2075_s24 + $0x28] sm:$0xff] %vm443_vm0, %v1311_v43  ;;  %v1297_v21 = vmul.f32 %v1289_v1, %v1287_v49 }
 0x41e   : > { %v1313_v20 = vadd.f32 %v1297_v21, %v1846_v28 }
 0x420   : > { %1321 = vst.msk [vmem:[%s2075_s24 + $0x38] sm:$0xff] %vm443_vm0, %v1313_v20 }
 0x421 PF: > { %s20_s13 = sadd.s32 1, %s1704_s13   ;;  %s2120_s11 = smov %s1700_s12 }
 0x422   : > { %p17_p5 = scmp.ge.s32.totalorder %s20_s13, 4   ;;  %s2121_s12 = smov %s2123_s8 }
 0x424   :  { %19 = sbr.rel (!%p17_p5) target bundleno = 2 (0x2), region = 97 }

</bundles_post_ra>
